<compile_context>
chip_gen: v5e
topology: v5e:2x2
jax: 0.10.0
libtpu: 0.0.40
codegen_flags: <defaults>
</compile_context>

<pallas_src>
import functools

import jax
import jax.numpy as jnp
from jax.experimental import pallas as pl
from jax.experimental.pallas import tpu as pltpu

_MIN_NORM = 1e-15          # matches the clamp_min used by pmath.logmap0
_ARTANH_CLAMP = 1.0 - 1e-7 # f32-safe artanh domain clamp


def _efusion_kernel(att_ref, xh_ref, xe_ref, out_ref, *, c):
    xh = xh_ref[...]                      # (tile_n, D) f32
    xe = xe_ref[...]                      # (tile_n, D) f32
    att = att_ref[0, 0]                   # scalar parameter from SMEM

    sqrt_c = jnp.float32(c) ** 0.5

    # --- logmap0(x_h, c): artanh(sqrt(c)*||x||) / (sqrt(c)*||x||) * x ---
    sq = jnp.sum(xh * xh, axis=-1, keepdims=True)            # XLU lane-reduce
    norm = jnp.maximum(jnp.sqrt(sq), _MIN_NORM)
    arg = jnp.minimum(sqrt_c * norm, _ARTANH_CLAMP)
    artanh = 0.5 * jnp.log((1.0 + arg) / (1.0 - arg))         # EUP log (no atanh lowering needed)
    lm = (artanh / (sqrt_c * norm)) * xh                      # (tile_n, D)

    # --- squared-distance gate, scaled by the learned att scalar ---
    diff = lm - xe
    dist = jnp.sum(diff * diff, axis=-1, keepdims=True) * att # (tile_n, 1)

    # F.dropout: identity in inference mode.
    # TODO(synk): training-mode stochastic dropout not implemented (would need pltpu PRNG).

    out_ref[...] = xe + dist * lm


def efusion_forward(x_h, x_e, att, *, c, tile_n=None):
    """EFusion.forward.  x_h, x_e: (N, D) float32; att: (1, 1) float32; c: python float."""
    N, D = x_h.shape
    if tile_n is None or tile_n >= N:
        tile_n = N
    assert N % tile_n == 0 and (tile_n % 8 == 0 or tile_n == N), (N, tile_n)

    kernel = functools.partial(_efusion_kernel, c=float(c))
    return pl.pallas_call(
        kernel,
        out_shape=jax.ShapeDtypeStruct((N, D), jnp.float32),
        grid_spec=pltpu.PrefetchScalarGridSpec(
            num_scalar_prefetch=0,
            grid=(N // tile_n,),
            in_specs=[
                pl.BlockSpec(memory_space=pltpu.MemorySpace.SMEM),   # att (1,1) scalar param
                pl.BlockSpec((tile_n, D), lambda i: (i, 0)),         # x_h row tile
                pl.BlockSpec((tile_n, D), lambda i: (i, 0)),         # x_e row tile
            ],
            out_specs=pl.BlockSpec((tile_n, D), lambda i: (i, 0)),
        ),
        compiler_params=pltpu.CompilerParams(
            dimension_semantics=("parallel",)),                      # v7x: split rows across TCs
    )(att, x_h, x_e)


def _reference_forward(x_h, x_e, att, c):
    sqrt_c = jnp.sqrt(jnp.float32(c))
    norm = jnp.maximum(jnp.sqrt(jnp.sum(x_h * x_h, axis=-1, keepdims=True)), _MIN_NORM)
    arg = jnp.minimum(sqrt_c * norm, _ARTANH_CLAMP)
    lm = (0.5 * jnp.log((1.0 + arg) / (1.0 - arg))) / (sqrt_c * norm) * x_h
    dist = jnp.sum((lm - x_e) ** 2, axis=-1, keepdims=True) * att[0, 0]
    return x_e + dist * lm   # eval-mode dropout == identity


if __name__ == "__main__":
    key = jax.random.PRNGKey(0)
    k_h, k_e = jax.random.split(key)

    # N nodes x D features; D = 128 keeps all loads/stores lane-dense.
    N, D = 64, 128
    c = 1.0
    tile_n = 32   # multiple of 8 (f32 sublane); grid = (2,)

    # x_h: points well inside the Poincare ball (||x|| < 1/sqrt(c)) so logmap0 is well-posed.
    x_h = 0.05 * jax.random.normal(k_h, (N, D), jnp.float32)
    x_e = jax.random.normal(k_e, (N, D), jnp.float32)
    # The torch module zero-initialises att; use a non-zero value here so the
    # fused-distance path is actually exercised (att=0 would trivially return x_e).
    att = jnp.full((1, 1), 0.37, jnp.float32)

    out = jax.block_until_ready(efusion_forward(x_h, x_e, att, c=c, tile_n=tile_n))
    ref = _reference_forward(x_h, x_e, att, c)

    assert out.shape == (N, D)
    assert jnp.allclose(out, ref, atol=1e-5, rtol=1e-5), (out, ref)
    print("KERNEL_OK")
</pallas_src>

<mosaic_0001>
module attributes {stable_mosaic.version = 11 : i64} {
  func.func @_efusion_kernel(%arg0: i32, %arg1: memref<1x1xf32, #tpu.memory_space<smem>>, %arg2: memref<32x128xf32, #tpu.memory_space<vmem>>, %arg3: memref<32x128xf32, #tpu.memory_space<vmem>>, %arg4: memref<32x128xf32, #tpu.memory_space<vmem>>) attributes {dimension_semantics = [#tpu.dimension_semantics<parallel>], iteration_bounds = array<i64: 2>, scalar_prefetch = 0 : i64, scratch_operands = 0 : i64, tpu.core_type = #tpu.core_type<tc>, window_params = [{transform_indices = @transform_0, window_bounds = array<i64: 1, 1>}, {transform_indices = @transform_1, window_bounds = array<i64: 32, 128>}, {transform_indices = @transform_2, window_bounds = array<i64: 32, 128>}, {transform_indices = @transform_3, window_bounds = array<i64: 32, 128>}]} {
    %c0 = arith.constant 0 : index
    %c0_0 = arith.constant 0 : index
    %0 = vector.load %arg2[%c0, %c0_0] : memref<32x128xf32, #tpu.memory_space<vmem>>, vector<32x128xf32>
    %c0_1 = arith.constant 0 : index
    %c0_2 = arith.constant 0 : index
    %1 = vector.load %arg3[%c0_1, %c0_2] : memref<32x128xf32, #tpu.memory_space<vmem>>, vector<32x128xf32>
    %c0_3 = arith.constant 0 : index
    %c0_4 = arith.constant 0 : index
    %2 = memref.load %arg1[%c0_3, %c0_4] : memref<1x1xf32, #tpu.memory_space<smem>>
    %cst = arith.constant 1.000000e+00 : f32
    %cst_5 = arith.constant 5.000000e-01 : f32
    %3 = math.powf %cst, %cst_5 : f32
    %4 = arith.mulf %0, %0 : vector<32x128xf32>
    %cst_6 = arith.constant dense<0.000000e+00> : vector<32xf32>
    %5 = vector.multi_reduction <add>, %4, %cst_6 [1] : vector<32x128xf32> to vector<32xf32>
    %6 = vector.shape_cast %5 : vector<32xf32> to vector<32x1xf32>
    %7 = math.sqrt %6 : vector<32x1xf32>
    %cst_7 = arith.constant 1.000000e-15 : f32
    %8 = vector.broadcast %cst_7 : f32 to vector<32x1xf32>
    %9 = arith.maximumf %7, %8 : vector<32x1xf32>
    %10 = vector.broadcast %3 : f32 to vector<32x1xf32>
    %11 = arith.mulf %10, %9 : vector<32x1xf32>
    %cst_8 = arith.constant 0.99999988 : f32
    %12 = vector.broadcast %cst_8 : f32 to vector<32x1xf32>
    %13 = arith.minimumf %11, %12 : vector<32x1xf32>
    %cst_9 = arith.constant 1.000000e+00 : f32
    %14 = vector.broadcast %cst_9 : f32 to vector<32x1xf32>
    %15 = arith.addf %14, %13 : vector<32x1xf32>
    %cst_10 = arith.constant 1.000000e+00 : f32
    %16 = vector.broadcast %cst_10 : f32 to vector<32x1xf32>
    %17 = arith.subf %16, %13 : vector<32x1xf32>
    %18 = arith.divf %15, %17 : vector<32x1xf32>
    %19 = math.log %18 : vector<32x1xf32>
    %cst_11 = arith.constant 5.000000e-01 : f32
    %20 = vector.broadcast %cst_11 : f32 to vector<32x1xf32>
    %21 = arith.mulf %20, %19 : vector<32x1xf32>
    %22 = vector.broadcast %3 : f32 to vector<32x1xf32>
    %23 = arith.mulf %22, %9 : vector<32x1xf32>
    %24 = arith.divf %21, %23 : vector<32x1xf32>
    %25 = vector.broadcast %24 : vector<32x1xf32> to vector<32x128xf32>
    %26 = arith.mulf %25, %0 : vector<32x128xf32>
    %27 = arith.subf %26, %1 : vector<32x128xf32>
    %28 = arith.mulf %27, %27 : vector<32x128xf32>
    %cst_12 = arith.constant dense<0.000000e+00> : vector<32xf32>
    %29 = vector.multi_reduction <add>, %28, %cst_12 [1] : vector<32x128xf32> to vector<32xf32>
    %30 = vector.shape_cast %29 : vector<32xf32> to vector<32x1xf32>
    %31 = vector.broadcast %2 : f32 to vector<32x1xf32>
    %32 = arith.mulf %30, %31 : vector<32x1xf32>
    %33 = vector.broadcast %32 : vector<32x1xf32> to vector<32x128xf32>
    %34 = arith.mulf %33, %26 : vector<32x128xf32>
    %35 = arith.addf %1, %34 : vector<32x128xf32>
    %c0_13 = arith.constant 0 : index
    %c0_14 = arith.constant 0 : index
    %36 = vector.load %arg4[%c0_13, %c0_14] : memref<32x128xf32, #tpu.memory_space<vmem>>, vector<32x128xf32>
    tpu.vector_store %arg4[%c0_13, %c0_14], %35 {strides = array<i32>} : memref<32x128xf32, #tpu.memory_space<vmem>>, vector<32x128xf32>,
    return
  }
  func.func @transform_0(%arg0: i32) -> (i32, i32) {
    %c0_i32 = arith.constant 0 : i32
    %c0_i32_0 = arith.constant 0 : i32
    %c0_i32_1 = arith.constant 0 : i32
    return %c0_i32, %c0_i32_0 : i32, i32
  }
  func.func @transform_1(%arg0: i32) -> (i32, i32) {
    %c0_i32 = arith.constant 0 : i32
    %c0_i32_0 = arith.constant 0 : i32
    return %arg0, %c0_i32 : i32, i32
  }
  func.func @transform_2(%arg0: i32) -> (i32, i32) {
    %c0_i32 = arith.constant 0 : i32
    %c0_i32_0 = arith.constant 0 : i32
    return %arg0, %c0_i32 : i32, i32
  }
  func.func @transform_3(%arg0: i32) -> (i32, i32) {
    %c0_i32 = arith.constant 0 : i32
    %c0_i32_0 = arith.constant 0 : i32
    return %arg0, %c0_i32 : i32, i32
  }
}

</mosaic_0001>

<bundles_post_ra>
// kernel: tpu_custom_call.1
= control target key start
LH: loop header
LB: loop body
LE: loop exit
PB: predicated region body
PF: predicated region fallthrough
CT: control target
= control target key end

     0   :  { %s1199_s0 = inlined_call_operand.<no memory space> [shape: f32[1,1], index: 0, kind: input, shape index: {}]   ;;  %s1200_s1 = inlined_call_operand.hbm [shape: f32[64,128], index: 1, kind: input, shape index: {}]   ;;  %s1201_s2 = inlined_call_operand.hbm [shape: f32[64,128], index: 2, kind: input, shape index: {}]   ;;  %s1202_s3 = inlined_call_operand.hbm [shape: f32[64,128], index: 3, kind: output, shape index: {}]  }
   0x1   :  { %8 = sst [smem:[#allocation2]] %s1199_s0 }
   0x2   :  { %9 = vsyncpa [#allocation4], 0 }
   0x3   :  { %11 = vsyncpa [#allocation4 + $0x1], 0 }
   0x4   :  { %12 = vsyncpa [#allocation7], 0 }
   0x5   :  { %14 = vsyncpa [#allocation7 + $0x1], 0 }
   0x6   :  { %15 = vsyncpa [#allocation5], 0 }
   0x7   :  { %17 = vsyncpa [#allocation5 + $0x1], 0  ;;  %s870_s14 = smov 0   ;;  %s872_s15 = smov 0  }
   0x8   :  { %s874_s16 = smov 0   ;;  %s876_s17 = smov 0  }
   0x9 LB: > { %s891_s0 = sadd.s32 4294967295, %s841_s17   ;;  %s603_s18 = sadd.s32 4294967294, %s841_s17   ;;  %s841_s17 = sphi %s876_s17, %s1221_s17   ;;  %s837_s16 = sphi %s874_s16, %s1220_s16   ;;  %s833_s15 = sphi %s872_s15, %s1219_s15   ;;  %s829_s14 = sphi %s870_s14, %s1218_s14  }
   0xa   : > { %s895_s19 = sadd.s32 1, %s841_s17   ;;  %s51_s20 = sadd.s32 1, %s837_s16 }
   0xb   : > { %s48_s21 = ssub.s32 %s841_s17, %s895_s19  ;;  %p58_p0 = scmp.ne.s32.totalorder %s837_s16, %s833_s15 }
   0xc   : > { %p49_p1 = scmp.eq.s32.totalorder %s48_s21, 0  ;;  %p59_p2 = scmp.eq.s32.totalorder %s841_s17, 0 }
   0xd   : > { %p64_p3 = scmp.ne.s32.totalorder %s833_s15, %s829_s14  ;;  %p65_p4 = scmp.eq.s32.totalorder %s891_s0, 0 }
   0xe   : > { %s907_s22 = scalar_select %p49_p1, %s837_s16, %s51_s20  }
   0xf   : > { %p909_p5 = por %p59_p2, %p58_p0  ;;  %p913_p6 = por %p65_p4, %p64_p3 }
  0x10   : > { %p114_p7 = scmp.eq.s32.totalorder %s891_s0, 1  ;;  %p120_p8 = scmp.eq.s32.totalorder %s603_s18, 1 }
  0x11   : > { %p641_p10 = scmp.lt.s32.totalorder %s841_s17, 2  ;;  %s929_s27 = sand.u32 1, %s837_s16  }
  0x12   : > { %p920_p11 = por %p114_p7, %p58_p0  ;;  %p924_p12 = por %p120_p8, %p64_p3 }
  0x13   : > { %s621_s28 = sshll.u32 %s841_s17, 5  ;;  %s606_s29 = sshll.u32 %s929_s27, 5 }
  0x14   : > { %s152_s5 = scalar_lea.hbm %s1200_s1, %s621_s28  ;;  %s147_s7 = scalar_lea.vmem [#allocation3], %s606_s29 }
  0x15   : > { %s153_s6 = sshll.u32 %s152_s5, 4  ;;  %s155_s8 = sshll.u32 %s147_s7, 4  ;;  %s154_s6 = int_to_ptr.hbm [resolvable:$true] %s153_s6  ;;  %s156_s8 = int_to_ptr.vmem [resolvable:$true] %s155_s8 }
  0x16   : > { %p942_p13 = pnand %p641_p10, %p909_p5  ;;  %p612_p0 = scmp.ge.s32.totalorder %s841_s17, 1 }
  0x17   : > { %p185_p1 = scmp.lt.s32.totalorder %s841_s17, 3  ;;  %s144_s10 = scalar_lea.sflag [#allocation4], %s929_s27 }
  0x18   : > { %s711_s11 = sshra.s32 %s154_s6, 4  ;;  %p715_p3 = pneg %p942_p13  ;;  %s712_s11 = int_to_ptr.hbm [resolvable:$true] %s711_s11 }
  0x19   : > { %s713_s12 = scalar_lea.hbm %s712_s11, 32  ;;  %s718_s20 = scalar_lea.hbm %s1200_s1, 64 }
  0x1a   : > { %p714_p2 = scmp.ne.s32.totalorder %s712_s11, %s713_s12  ;;  %p719_p5 = scmp.lt.s32.totalorder %s712_s11, %s1200_s1 }
  0x1b   : > { %p720_p8 = scmp.lt.s32.totalorder %s718_s20, %s713_s12 }
  0x1c   : > { %p716_p4 = pnand %p715_p3, %p714_p2 }
  0x1d   : > { %p721_p10 = por %p720_p8, %p719_p5 }
  0x1e   : > { %p717_p7 = pneg %p716_p4 }
  0x20   : > { %p722_p9 = pnand %p721_p10, %p717_p7 }
  0x22   : > { %725 = shalt.err (!%p722_p9)
}
  0x23   : > { %s843_s30 = smov 128   ;;  %s844_s4 = smov 8  }
  0x24   : > { %633 = dma.hbm_to_vmem [thread:$0]  (!%p942_p13), %s154_s6, 512, %s156_s8, %s144_s10, %s843_s30, %s843_s30, %s844_s4  }
  0x25   : > { %p966_p2 = pnand %p612_p0, %p185_p1  ;;  %s174_s12 = scalar_lea.hbm %s1201_s2, %s621_s28 }
  0x26   : > { %s175_s13 = sshll.u32 %s174_s12, 4  ;;  %s169_s18 = scalar_lea.vmem [#allocation6], %s606_s29  ;;  %s176_s13 = int_to_ptr.hbm [resolvable:$true] %s175_s13 }
  0x27   : > { %s177_s20 = sshll.u32 %s169_s18, 4  ;;  %s166_s21 = scalar_lea.sflag [#allocation7], %s929_s27  ;;  %s178_s20 = int_to_ptr.vmem [resolvable:$true] %s177_s20 }
  0x28   : > { %s741_s23 = sshra.s32 %s176_s13, 4  ;;  %s748_s7 = scalar_lea.hbm %s1201_s2, 64  ;;  %s742_s23 = int_to_ptr.hbm [resolvable:$true] %s741_s23 }
  0x29   : > { %s743_s6 = scalar_lea.hbm %s742_s23, 32  ;;  %p749_p4 = scmp.lt.s32.totalorder %s742_s23, %s1201_s2 }
  0x2a   : > { %p744_p9 = scmp.ne.s32.totalorder %s742_s23, %s743_s6  ;;  %p750_p7 = scmp.lt.s32.totalorder %s748_s7, %s743_s6 }
  0x2c   : > { %p746_p0 = pnand %p744_p9, %p715_p3  ;;  %p751_p5 = por %p750_p7, %p749_p4 }
  0x2e   : > { %p747_p1 = pneg %p746_p0 }
  0x30   : > { %p752_p8 = pnand %p751_p5, %p747_p1 }
  0x32   : > { %755 = shalt.err (!%p752_p8)
}
  0x33   : > { %636 = dma.hbm_to_vmem [thread:$0]  (!%p942_p13), %s176_s13, 512, %s178_s20, %s166_s21, %s843_s30, %s843_s30, %s844_s4  }
  0x34   : > { %189 = sbr.rel (%p966_p2) target bundleno = 391 (0x187), region = 32  ;;  %s992_s27 = sand.u32 (!%p966_p2), 1, %s833_s15  }
  0x35   : > { %s995_s29 = sshll.u32 (!%p966_p2), %s992_s27, 5  ;;  %s192_s12 = scalar_lea.sflag (!%p966_p2), [#allocation4], %s992_s27 }
  0x36   : > { %s195_s18 = scalar_lea.vmem (!%p966_p2), [#allocation3], %s995_s29 }
  0x39   : > { %816 = dma.done.wait (%p913_p6), %s192_s12, 512  }
  0x3a   : > { %818 = vsyncadd (%p913_p6), %s192_s12, 4294966784  ;;  %s202_s9 = scalar_lea.sflag [#allocation7], %s992_s27  ;;  %s1005_s30 = scalar_lea.vmem [#allocation6], %s995_s29 }
  0x3b   : > { %820 = dma.done.wait (%p913_p6), %s202_s9, 512  }
  0x3c   : > { %822 = vsyncadd (%p913_p6), %s202_s9, 4294966784  ;;  %v1011_v0 = vld [vmem:[%s195_s18 + $0x10] sm:$0xff]  ;;  %v1013_v1 = vld [vmem:[%s195_s18] sm:$0xff]  ;;  %s245_s24 = sld [smem:[#allocation2]]  ;;  %s233_s4 = scalar_lea.vmem [#allocation8], %s995_s29 }
  0x3d   : > { %v248_v2 = vmul.f32 %v1011_v0, %v1011_v0  ;;  %v246_v3 = vmul.f32 %v1013_v1, %v1013_v1  ;;  %v1019_v4 = vld [vmem:[%s195_s18 + $0x18] sm:$0xff]  ;;  %v1021_v5 = vld [vmem:[%s195_s18 + $0x8] sm:$0xff]  ;;  %s623_s5 = sshll.u32 %s891_s0, 5  ;;  %s504_s23 = sshll.u32 %s233_s4, 4  ;;  %s505_s23 = int_to_ptr.vmem [resolvable:$true] %s504_s23 }
  0x3e   : > { %v249_v6 = vmul.f32 %v1019_v4, %v1019_v4  ;;  %v247_v7 = vmul.f32 %v1021_v5, %v1021_v5  ;;  %s503_s21 = scalar_lea.hbm %s1202_s3, %s623_s5  ;;  %s492_s8 = scalar_lea.sflag [#allocation5], %s992_s27 }
  0x3f   : > { %254 = vadd.xlane.f32.xlu1 %v248_v2  ;;  %250 = vadd.xlane.f32.xlu0 %v246_v3  ;;  %s506_s6 = sshll.u32 %s503_s21, 4  ;;  %s791_s11 = scalar_lea.hbm %s1202_s3, 64  ;;  %s507_s6 = int_to_ptr.hbm [resolvable:$true] %s506_s6 }
  0x40   : > { %s785_s10 = sshra.s32 %s507_s6, 4  ;;  %s786_s10 = int_to_ptr.hbm [resolvable:$true] %s785_s10 }
  0x41   : > { %s787_s7 = scalar_lea.hbm %s786_s10, 32  ;;  %p792_p10 = scmp.lt.s32.totalorder %s786_s10, %s1202_s3 }
  0x42   : > { %p788_p6 = scmp.ne.s32.totalorder %s786_s10, %s787_s7  ;;  %p793_p2 = scmp.lt.s32.totalorder %s791_s11, %s787_s7 }
  0x44   : > { %p789_p13 = pnand %p788_p6, %p920_p11  ;;  %p794_p9 = por %p793_p2, %p792_p10 }
  0x46   : > { %p790_p3 = pneg %p789_p13 }
  0x47   : > { %256 = vadd.xlane.f32.xlu1 %v249_v6  ;;  %252 = vadd.xlane.f32.xlu0 %v247_v7 }
  0x48   : > { %p795_p0 = pnand %p794_p9, %p790_p3 }
  0xb2   : > { %v255_v8 = vpop.xlane.xlu1 %254  ;;  %v251_v9 = vpop.xlane.xlu0 %250 }
  0xb3   : > { %679 = vrsqrt.f32 %v255_v8  ;;  %vm289_vm0 = vcmp.eq.f32.partialorder %v255_v8, inf  ;;  %vm291_vm1 = vcmp.eq.f32.partialorder %v255_v8, 0.0  ;;  %v292_v30 = vand.u32 2147483648, %v255_v8 }
  0xb4   : > { %681 = vrsqrt.f32 %v251_v9  ;;  %vm265_vm2 = vcmp.eq.f32.partialorder %v251_v9, inf  ;;  %v268_v34 = vand.u32 2147483648, %v251_v9  ;;  %vm267_vm3 = vcmp.eq.f32.partialorder %v251_v9, 0.0 }
  0xb9   : > { %v680_v10 = vpop.eup %679 }
  0xba   : > { %v682_v11 = vpop.eup %681  ;;  %v283_v12 = vmul.f32 %v680_v10, %v255_v8  ;;  %v257_v13 = vpop.xlane.xlu1 %256 }
  0xbb   : > { %v1027_v14 = vpop.xlane.xlu0 %252  ;;  %v259_v15 = vmul.f32 %v682_v11, %v251_v9  ;;  %683 = vrsqrt.f32 %v257_v13  ;;  %vm301_vm4 = vcmp.eq.f32.partialorder %v257_v13, inf  ;;  %v304_v49 = vand.u32 2147483648, %v257_v13 }
  0xbc   : > { %v284_v16 = vmul.f32 %v680_v10, %v283_v12  ;;  %685 = vrsqrt.f32 %v1027_v14  ;;  %vm303_vm5 = vcmp.eq.f32.partialorder %v257_v13, 0.0  ;;  %vm277_vm6 = vcmp.eq.f32.partialorder %v1027_v14, inf }
  0xbd   : > { %v260_v17 = vmul.f32 %v682_v11, %v259_v15  ;;  %v280_v60 = vand.u32 2147483648, %v1027_v14  ;;  %vm279_vm7 = vcmp.eq.f32.partialorder %v1027_v14, 0.0 }
  0xbe   : > { %v285_v18 = vmul.f32 0.5, %v284_v16 }
  0xbf   : > { %v261_v19 = vmul.f32 0.5, %v260_v17 }
  0xc0   : > { %v286_v20 = vsub.f32 1.5, %v285_v18 }
  0xc1   : > { %v684_v21 = vpop.eup %683  ;;  %v262_v22 = vsub.f32 1.5, %v261_v19 }
  0xc2   : > { %v686_v23 = vpop.eup %685  ;;  %v287_v24 = vmul.f32 %v680_v10, %v286_v20  ;;  %v295_v25 = vmul.f32 %v684_v21, %v257_v13 }
  0xc3   : > { %v263_v26 = vmul.f32 %v682_v11, %v262_v22  ;;  %v271_v27 = vmul.f32 %v686_v23, %v1027_v14 }
  0xc4   : > { %v288_v28 = vmul.f32 %v287_v24, %v255_v8  ;;  %v296_v29 = vmul.f32 %v684_v21, %v295_v25 }
  0xc5   : > { %v264_v31 = vmul.f32 %v263_v26, %v251_v9  ;;  %v272_v32 = vmul.f32 %v686_v23, %v271_v27 }
  0xc6   : > { %v290_v33 = vsel %vm289_vm0, %v255_v8, %v288_v28  ;;  %v297_v35 = vmul.f32 0.5, %v296_v29 }
  0xc7   : > { %v293_v36 = vsel %vm291_vm1, %v292_v30, %v290_v33  ;;  %v266_v37 = vsel %vm265_vm2, %v251_v9, %v264_v31  ;;  %v273_v38 = vmul.f32 0.5, %v272_v32 }
  0xc8   : > { %v1031_v39 = vmax.f32 %v293_v36, 1e-15  ;;  %v269_v40 = vsel %vm267_vm3, %v268_v34, %v266_v37  ;;  %v298_v41 = vsub.f32 1.5, %v297_v35 }
  0xc9   : > { %v1033_v42 = vmax.f32 %v269_v40, 1e-15  ;;  %v274_v43 = vsub.f32 1.5, %v273_v38 }
  0xca   : > { %v299_v44 = vmul.f32 %v684_v21, %v298_v41  ;;  %v312_v45 = vmin.f32 %v1031_v39, 0.9999999  ;;  %687 = vrcp.f32 %v1031_v39  ;;  %v435_v29 = vand.u32 2147483648, %v1031_v39 }
  0xcb   : > { %v310_v48 = vmin.f32 %v1033_v42, 0.9999999  ;;  %v275_v50 = vmul.f32 %v686_v23, %v274_v43  ;;  %vm429_vm2 = vweird.f32 %v1031_v39 }
  0xcc   : > { %v300_v46 = vmul.f32 %v299_v44, %v257_v13  ;;  %v320_v47 = vsub.f32 1.0, %v312_v45  ;;  %v316_v16 = vadd.f32 1.0, %v312_v45 }
  0xcd   : > { %v318_v53 = vsub.f32 1.0, %v310_v48  ;;  %v276_v54 = vmul.f32 %v275_v50, %v1027_v14  ;;  %v314_v30 = vadd.f32 1.0, %v310_v48  ;;  %v433_v48 = vand.u32 2147483647, %v1031_v39 }
  0xce   : > { %v302_v51 = vsel %vm301_vm4, %v257_v13, %v300_v46  ;;  %689 = vrcp.f32 %v320_v47  ;;  %v363_v6 = vand.u32 2147483648, %v320_v47  ;;  %v361_v9 = vand.u32 2147483647, %v320_v47 }
  0xcf   : > { %v305_v52 = vsel %vm303_vm5, %v304_v49, %v302_v51  ;;  %691 = vrcp.f32 %v1033_v42  ;;  %v278_v58 = vsel %vm277_vm6, %v1027_v14, %v276_v54  ;;  %vm357_vm9 = vweird.f32 %v320_v47 }
  0xd0   : > { %v1040_v55 = vmax.f32 %v305_v52, 1e-15  ;;  %v1042_v56 = vpop.eup %687  ;;  %693 = vrcp.f32 %v318_v53  ;;  %v281_v3 = vsel %vm279_vm7, %v280_v60, %v278_v58  ;;  %v364_v17 = vor.u32 1.1754944e-38, %v363_v6 }
  0xd1   : > { %v425_v61 = vmul.f32 %v1042_v56, %v1031_v39  ;;  %v1061_v13 = vmax.f32 %v281_v3, 1e-15  ;;  %vm362_vm11 = vcmp.eq.f32.partialorder %v361_v9, 8.507059e+37  ;;  %v331_v20 = vand.u32 2147483647, %v318_v53 }
  0xd2   : > { %v313_v62 = vmin.f32 %v1040_v55, 0.9999999  ;;  %v333_v23 = vand.u32 2147483648, %v318_v53  ;;  %vm430_vm13 = vweird.f32 %v1042_v56  ;;  %vm327_vm14 = vweird.f32 %v318_v53 }
  0xd3   : > { %v426_v11 = vsub.f32 1.0, %v425_v61  ;;  %v311_v27 = vmin.f32 %v1061_v13, 0.9999999  ;;  %vm332_vm0 = vcmp.eq.f32.partialorder %v331_v20, 8.507059e+37  ;;  %v436_v49 = vor.u32 1.1754944e-38, %v435_v29  ;;  %vm1087_vm4 = vmor %vm429_vm2, %vm430_vm13 }
  0xd4   : > { %v690_v57 = vpop.eup %689  ;;  %v1055_v7 = vsub.f32 1.0, %v313_v62  ;;  %v334_v34 = vor.u32 1.1754944e-38, %v333_v23  ;;  %v403_v52 = vand.u32 2147483647, %v1033_v42  ;;  %v317_v61 = vadd.f32 1.0, %v313_v62 }
  0xd5   : > { %v353_v59 = vmul.f32 %v690_v57, %v320_v47  ;;  %v1050_v63 = vpop.eup %691  ;;  %vm358_vm8 = vweird.f32 %v690_v57  ;;  %v427_v22 = vmul.f32 %v1042_v56, %v426_v11  ;;  %v1073_v35 = vsub.f32 1.0, %v311_v27 }
  0xd6   : > { %v694_v10 = vpop.eup %693  ;;  %v395_v12 = vmul.f32 %v1050_v63, %v1033_v42  ;;  %695 = vrcp.f32 %v1055_v7  ;;  %vm359_vm10 = vmor %vm357_vm9, %vm358_vm8  ;;  %v378_v43 = vand.u32 2147483648, %v1055_v7  ;;  %v376_v47 = vand.u32 2147483647, %v1055_v7 }
  0xd7   : > { %v354_v2 = vsub.f32 1.0, %v353_v59  ;;  %697 = vrcp.f32 %v1040_v55  ;;  %v323_v15 = vmul.f32 %v694_v10, %v318_v53  ;;  %vm328_vm12 = vweird.f32 %v694_v10 }
  0xd8   : > { %v396_v24 = vsub.f32 1.0, %v395_v12  ;;  %vm329_vm15 = vmor %vm327_vm14, %vm328_vm12  ;;  %v428_v36 = vadd.f32 %v1042_v56, %v427_v22  ;;  %vm400_vm3 = vweird.f32 %v1050_v63  ;;  %vm372_vm5 = vweird.f32 %v1055_v7 }
  0xd9   : > { %v355_v8 = vmul.f32 %v690_v57, %v354_v2  ;;  %v324_v19 = vsub.f32 1.0, %v323_v15  ;;  %v379_v58 = vor.u32 1.1754944e-38, %v378_v43  ;;  %vm377_vm7 = vcmp.eq.f32.partialorder %v376_v47, 8.507059e+37 }
  0xda   : > { %v397_v38 = vmul.f32 %v1050_v63, %v396_v24  ;;  %v432_v39 = vsel %vm1087_vm4, %v1042_v56, %v428_v36  ;;  %vm434_vm8 = vcmp.eq.f32.partialorder %v433_v48, 8.507059e+37  ;;  %vm399_vm9 = vweird.f32 %v1033_v42 }
  0xdb   : > { %v356_v14 = vadd.f32 %v690_v57, %v355_v8  ;;  %v325_v26 = vmul.f32 %v694_v10, %v324_v19  ;;  %v437_v8 = vsel %vm434_vm8, %v436_v49, %v432_v39  ;;  %v405_v56 = vand.u32 2147483648, %v1033_v42  ;;  %v1118_v42 = vld [vmem:[%s1005_s30 + $0x10] sm:$0xff] }
  0xdc   : > { %v696_v28 = vpop.eup %695  ;;  %v398_v60 = vadd.f32 %v1050_v63, %v397_v38  ;;  %vm444_vm12 = vweird.f32 %v1040_v55  ;;  %v450_v29 = vand.u32 2147483648, %v1040_v55  ;;  %v241_v38 = vld [vmem:[%s1005_s30] sm:$0xff] }
  0xdd   : > { %v360_v18 = vsel %vm359_vm10, %v690_v57, %v356_v14  ;;  %v1067_v31 = vpop.eup %697  ;;  %v326_v32 = vadd.f32 %v694_v10, %v325_v26  ;;  %v368_v33 = vmul.f32 %v696_v28, %v1055_v7  ;;  %vm373_vm1 = vweird.f32 %v696_v28  ;;  %vm1107_vm10 = vmor %vm399_vm9, %vm400_vm3 }
  0xde   : > { %v365_v21 = vsel %vm362_vm11, %v364_v17, %v360_v18  ;;  %v440_v44 = vmul.f32 %v1067_v31, %v1040_v55  ;;  %vm374_vm6 = vmor %vm372_vm5, %vm373_vm1  ;;  %vm1111_vm11 = vcmp.eq.f32.partialorder %v403_v52, 8.507059e+37  ;;  %v448_v17 = vand.u32 2147483647, %v1040_v55 }
  0xdf   : > { %v366_v25 = vmul.f32 %v365_v21, %v316_v16  ;;  %v330_v37 = vsel %vm329_vm15, %v694_v10, %v326_v32  ;;  %v369_v40 = vsub.f32 1.0, %v368_v33  ;;  %v402_v16 = vsel %vm1107_vm10, %v1050_v63, %v398_v60 }
  0xe0   : > { %v335_v41 = vsel %vm332_vm0, %v334_v34, %v330_v37  ;;  %v441_v59 = vsub.f32 1.0, %v440_v44  ;;  %v348_v21 = vand.u32 2147483648, %v1073_v35  ;;  %v406_v23 = vor.u32 1.1754944e-38, %v405_v56 }
  0xe1   : > { %699 = vlog2.f32 %v366_v25  ;;  %v336_v45 = vmul.f32 %v335_v41, %v314_v30  ;;  %v370_v46 = vmul.f32 %v696_v28, %v369_v40  ;;  %v346_v25 = vand.u32 2147483647, %v1073_v35 }
  0xe2   : > { %701 = vrcp.f32 %v1061_v13  ;;  %v442_v14 = vmul.f32 %v1067_v31, %v441_v59  ;;  %vm445_vm14 = vweird.f32 %v1067_v31  ;;  %vm342_vm15 = vweird.f32 %v1073_v35 }
  0xe3   : > { %703 = vrcp.f32 %v1073_v35  ;;  %v371_v53 = vadd.f32 %v696_v28, %v370_v46  ;;  %v349_v34 = vor.u32 1.1754944e-38, %v348_v21  ;;  %vm1142_vm1 = vmor %vm444_vm12, %vm445_vm14  ;;  %v315_v41 = vadd.f32 1.0, %v311_v27 }
  0xe4   : > { %705 = vlog2.f32 %v336_v45  ;;  %vm347_vm2 = vcmp.eq.f32.partialorder %v346_v25, 8.507059e+37  ;;  %v451_v55 = vor.u32 1.1754944e-38, %v450_v29  ;;  %vm449_vm3 = vcmp.eq.f32.partialorder %v448_v17, 8.507059e+37 }
  0xe5   : > { %v375_v2 = vsel %vm374_vm6, %v696_v28, %v371_v53  ;;  %v443_v28 = vadd.f32 %v1067_v31, %v442_v14  ;;  %v244_v53 = vld [vmem:[%s1005_s30 + $0x18] sm:$0xff]  ;;  %vm414_vm5 = vweird.f32 %v1061_v13 }
  0xe6   : > { %v380_v7 = vsel %vm377_vm7, %v379_v58, %v375_v2  ;;  %v418_v58 = vand.u32 2147483647, %v1061_v13 }
  0xe7   : > { %v700_v50 = vpop.eup %699  ;;  %v381_v9 = vmul.f32 %v380_v7, %v317_v61  ;;  %v447_v45 = vsel %vm1142_vm1, %v1067_v31, %v443_v28  ;;  %v420_v31 = vand.u32 2147483648, %v1061_v13 }
  0xe8   : > { %v1093_v54 = vpop.eup %701  ;;  %v387_v57 = vmul.f32 0.6931472, %v700_v50  ;;  %v452_v27 = vsel %vm449_vm3, %v451_v55, %v447_v45  ;;  %vm419_vm7 = vcmp.eq.f32.partialorder %v418_v58, 8.507059e+37 }
  0xe9   : > { %v704_v3 = vpop.eup %703  ;;  %707 = vlog2.f32 %v381_v9  ;;  %v410_v22 = vmul.f32 %v1093_v54, %v1061_v13  ;;  %vm415_vm4 = vweird.f32 %v1093_v54  ;;  %v474_v13 = vstv %s245_s24 }
  0xea   : > { %v392_v6 = vmul.f32 0.5, %v387_v57  ;;  %v338_v10 = vmul.f32 %v704_v3, %v1073_v35  ;;  %v706_v15 = vpop.eup %705  ;;  %vm343_vm13 = vweird.f32 %v704_v3  ;;  %vm416_vm6 = vmor %vm414_vm5, %vm415_vm4 }
  0xeb   : > { %v383_v20 = vmul.f32 0.6931472, %v706_v15  ;;  %vm344_vm0 = vmor %vm342_vm15, %vm343_vm13  ;;  %v411_v36 = vsub.f32 1.0, %v410_v22 }
  0xec   : > { %v438_v11 = vmul.f32 %v437_v8, %v392_v6  ;;  %v339_v18 = vsub.f32 1.0, %v338_v10  ;;  %v242_v8 = vld [vmem:[%s1005_s30 + $0x8] sm:$0xff] }
  0xed   : > { %v390_v26 = vmul.f32 0.5, %v383_v20  ;;  %v412_v50 = vmul.f32 %v1093_v54, %v411_v36 }
  0xee   : > { %v1125_v19 = vmul.f32 %v438_v11, %v1011_v0  ;;  %v340_v24 = vmul.f32 %v704_v3, %v339_v18  ;;  %v407_v0 = vsel %vm1111_vm11, %v406_v23, %v402_v16 }
  0xef   : > { %v408_v33 = vmul.f32 %v407_v0, %v390_v26  ;;  %v708_v37 = vpop.eup %707  ;;  %v413_v57 = vadd.f32 %v1093_v54, %v412_v50 }
  0xf0   : > { %v460_v63 = vsub.f32 %v1125_v19, %v1118_v42  ;;  %v341_v30 = vadd.f32 %v704_v3, %v340_v24  ;;  %v389_v44 = vmul.f32 0.6931472, %v708_v37 }
  0xf1   : > { %v454_v35 = vmul.f32 %v408_v33, %v1013_v1  ;;  %v417_v2 = vsel %vm416_vm6, %v1093_v54, %v413_v57 }
  0xf2   : > { %v464_v32 = vmul.f32 %v460_v63, %v460_v63  ;;  %v345_v43 = vsel %vm344_vm0, %v704_v3, %v341_v30  ;;  %v393_v49 = vmul.f32 0.5, %v389_v44  ;;  %v421_v3 = vor.u32 1.1754944e-38, %v420_v31 }
  0xf3   : > { %v350_v46 = vsel %vm347_vm2, %v349_v34, %v345_v43  ;;  %v458_v48 = vsub.f32 %v454_v35, %v241_v38 }
  0xf4   : > { %470 = vadd.xlane.f32.xlu0 %v464_v32  ;;  %v351_v47 = vmul.f32 %v350_v46, %v315_v41  ;;  %v453_v52 = vmul.f32 %v452_v27, %v393_v49  ;;  %v422_v6 = vsel %vm419_vm7, %v421_v3, %v417_v2 }
  0xf5   : > { %v462_v51 = vmul.f32 %v458_v48, %v458_v48 }
  0xf6   : > { %709 = vlog2.f32 %v351_v47  ;;  %v457_v1 = vmul.f32 %v453_v52, %v1019_v4 }
  0xf7   : > { %466 = vadd.xlane.f32.xlu2 %v462_v51 }
  0xf8   : > { %v461_v39 = vsub.f32 %v457_v1, %v244_v53 }
  0xfa   : > { %v465_v60 = vmul.f32 %v461_v39, %v461_v39 }
  0xfc   : > { %v710_v59 = vpop.eup %709  ;;  %472 = vadd.xlane.f32.xlu1 %v465_v60 }
  0xfd   : > { %v385_v61 = vmul.f32 0.6931472, %v710_v59 }
  0xff   : > { %v391_v4 = vmul.f32 0.5, %v385_v61 }
 0x101   : > { %v423_v7 = vmul.f32 %v422_v6, %v391_v4 }
 0x103   : > { %v455_v56 = vmul.f32 %v423_v7, %v1021_v5 }
 0x105   : > { %v459_v9 = vsub.f32 %v455_v56, %v242_v8 }
 0x107   : > { %v463_v10 = vmul.f32 %v459_v9, %v459_v9 }
 0x109   : > { %468 = vadd.xlane.f32.xlu2 %v463_v10 }
 0x167   : > { %v471_v11 = vpop.xlane.xlu0 %470 }
 0x168   : > { %v477_v62 = vmul.f32 %v474_v13, %v471_v11 }
 0x16a   : > { %v481_v54 = vmul.f32 %v477_v62, %v1125_v19  ;;  %v467_v14 = vpop.xlane.xlu2 %466 }
 0x16b   : > { %v475_v15 = vmul.f32 %v474_v13, %v467_v14 }
 0x16c   : > { %v485_v12 = vadd.f32 %v481_v54, %v1118_v42 }
 0x16d   : > { %v479_v16 = vmul.f32 %v475_v15, %v454_v35 }
 0x16e   : > { %489 = vst [vmem:[%s233_s4 + $0x10] sm:$0xff] %v485_v12 }
 0x16f   : > { %v483_v17 = vadd.f32 %v479_v16, %v241_v38  ;;  %v473_v18 = vpop.xlane.xlu1 %472 }
 0x170   : > { %v478_v5 = vmul.f32 %v474_v13, %v473_v18 }
 0x171   : > { %487 = vst [vmem:[%s233_s4] sm:$0xff] %v483_v17 }
 0x172   : > { %v482_v20 = vmul.f32 %v478_v5, %v457_v1 }
 0x174   : > { %v486_v21 = vadd.f32 %v482_v20, %v244_v53 }
 0x176   : > { %490 = vst [vmem:[%s233_s4 + $0x18] sm:$0xff] %v486_v21 }
 0x17c   : > { %v469_v42 = vpop.xlane.xlu2 %468 }
 0x17d   : > { %v476_v19 = vmul.f32 %v474_v13, %v469_v42 }
 0x17f   : > { %v480_v22 = vmul.f32 %v476_v19, %v455_v56 }
 0x181   : > { %v484_v23 = vadd.f32 %v480_v22, %v242_v8 }
 0x183   : > { %488 = vst [vmem:[%s233_s4 + $0x8] sm:$0xff] %v484_v23 }
 0x184   : > { %798 = shalt.err (!%p795_p0)
}
 0x185   : > { %s845_s27 = smov 128   ;;  %s846_s18 = smov 8  }
 0x186   : > { %628 = dma.vmem_to_hbm [thread:$0]  (%p920_p11), %s505_s23, 512, %s507_s6, %s492_s8, %s845_s27, %s845_s27, %s846_s18  }
 0x187 PF: > { %s521_s9 = sand.u32 1, %s829_s14   ;;  %p1217_p1 = scmp.ge.s32.totalorder %s841_s17, 2 }
 0x188   : > { %s522_s30 = scalar_lea.sflag [#allocation5], %s521_s9 }
 0x189   : > { %p638_p4 = pnand %p1217_p1, %p924_p12 }
 0x18b   : > { %p639_p7 = pneg %p638_p4 }
 0x18d   : > { %824 = dma.done.wait (%p639_p7), %s522_s30, 512  }
 0x18e   : > { %826 = vsyncadd (%p639_p7), %s522_s30, 4294966784  ;;  %p20_p5 = scmp.ge.s32.totalorder %s895_s19, 4   ;;  %s1218_s14 = smov %s833_s15 }
 0x18f   : > { %s1219_s15 = smov %s837_s16  ;;  %s1220_s16 = smov %s907_s22 }
 0x190   : > { %s1221_s17 = smov %s895_s19  ;;  %22 = sbr.rel (!%p20_p5) target bundleno = 9 (0x9), region = 90 }
 0x195   :  { %528 = vsyncpa [#allocation4], 1 }
 0x196   :  { %530 = vsyncpa [#allocation4 + $0x1], 1 }
 0x197   :  { %531 = vsyncpa [#allocation7], 1 }
 0x198   :  { %533 = vsyncpa [#allocation7 + $0x1], 1 }
 0x199   :  { %534 = vsyncpa [#allocation5], 1 }
 0x19a   :  { %536 = vsyncpa [#allocation5 + $0x1], 1 }

</bundles_post_ra>
